<compile_context>
chip_gen: v6e
topology: v6e:2x2x1
jax: 0.10.0
libtpu: 0.0.40
codegen_flags: <defaults>
</compile_context>

<pallas_src>
import functools

import jax
import jax.numpy as jnp
from jax.experimental import pallas as pl
from jax.experimental.pallas import tpu as pltpu

F32 = jnp.float32

# Per-batch (C, HW) slab limit (in f32 bytes) for the fully fused path.  With
# double-buffered in+out plus an f32 working copy this keeps peak VMEM well
# under the default scoped budget on every generation (16 MiB on v5e).
_FUSED_SLAB_F32_BYTES = 2 * 1024 * 1024
# Target bytes of one spatial tile of x in the multi-pass fallback.
_TILE_BYTES = 2 * 1024 * 1024


# ----------------------------------------------------------------------------
# Kernel bodies
# ----------------------------------------------------------------------------
def _mlp_att_col(avg_col, max_col, w1t_ref, b1_ref, w2t_ref, b2_ref):
    """Shared MLP on both pooled (C, 1) columns, sum, sigmoid.  Column form:
    h = relu(w1^T @ v + b1), y = w2^T @ h + b2 -- avoids any lane<->sublane
    relayout because the pooled vectors already live column-major."""
    w1t = w1t_ref[...].astype(F32)        # (mid, C)
    b1 = b1_ref[...].astype(F32)          # (mid, 1)
    w2t = w2t_ref[...].astype(F32)        # (C, mid)
    b2 = b2_ref[...].astype(F32)          # (C, 1)

    def mlp(v):                           # v: (C, 1)
        h = jnp.maximum(jnp.dot(w1t, v, preferred_element_type=F32) + b1, 0.0)
        return jnp.dot(w2t, h, preferred_element_type=F32) + b2

    return jax.nn.sigmoid(mlp(avg_col) + mlp(max_col))     # (C, 1)


def _fused_kernel(inv_hw, x_ref, w1t_ref, b1_ref, w2t_ref, b2_ref, o_ref):
    """One batch element end-to-end: pool -> MLP -> sigmoid -> scale."""
    x = x_ref[0].astype(F32)                                  # (C, HW)
    avg = jnp.sum(x, axis=-1, keepdims=True) * inv_hw         # (C, 1)
    mx = jnp.max(x, axis=-1, keepdims=True)                   # (C, 1)
    att = _mlp_att_col(avg, mx, w1t_ref, b1_ref, w2t_ref, b2_ref)
    o_ref[0] = (x * att).astype(o_ref.dtype)


def _pool_mlp_kernel(inv_hw, x_ref, w1t_ref, b1_ref, w2t_ref, b2_ref, att_ref,
                     sum_sc, max_sc):
    """Fallback pass 1: tiled avg/max pool with the MLP fused into finalize."""
    j = pl.program_id(1)

    @pl.when(j == 0)
    def _():
        sum_sc[...] = jnp.zeros_like(sum_sc)
        max_sc[...] = jnp.full_like(max_sc, -jnp.inf)

    x = x_ref[0].astype(F32)                                  # (C, THW)
    sum_sc[...] += jnp.sum(x, axis=-1, keepdims=True)         # (C, 1)
    max_sc[...] = jnp.maximum(max_sc[...],
                              jnp.max(x, axis=-1, keepdims=True))

    @pl.when(j == pl.num_programs(1) - 1)
    def _():
        avg = sum_sc[...] * inv_hw
        att = _mlp_att_col(avg, max_sc[...], w1t_ref, b1_ref, w2t_ref, b2_ref)
        att_ref[0] = att.astype(att_ref.dtype)


def _apply_kernel(x_ref, att_ref, o_ref):
    """Fallback pass 2: out = x * att (att broadcast over the spatial axis)."""
    o_ref[...] = (x_ref[...].astype(F32) * att_ref[...]).astype(o_ref.dtype)


# ----------------------------------------------------------------------------
# Cached pallas_call builders (one build per shape signature)
# ----------------------------------------------------------------------------
@functools.lru_cache(maxsize=None)
def _build_fused(N, C, HW, mid, x_dtype_name):
    dtype = jnp.dtype(x_dtype_name)
    kernel = functools.partial(_fused_kernel, 1.0 / HW)
    return pl.pallas_call(
        kernel,
        out_shape=jax.ShapeDtypeStruct((N, C, HW), dtype),
        grid=(N,),
        in_specs=[pl.BlockSpec((1, C, HW), lambda n: (n, 0, 0)),
                  pl.BlockSpec((mid, C), lambda n: (0, 0)),
                  pl.BlockSpec((mid, 1), lambda n: (0, 0)),
                  pl.BlockSpec((C, mid), lambda n: (0, 0)),
                  pl.BlockSpec((C, 1), lambda n: (0, 0))],
        out_specs=pl.BlockSpec((1, C, HW), lambda n: (n, 0, 0)),
        compiler_params=pltpu.CompilerParams(
            dimension_semantics=("parallel",)),
    )


@functools.lru_cache(maxsize=None)
def _build_pool_mlp(N, C, HW, THW, mid):
    kernel = functools.partial(_pool_mlp_kernel, 1.0 / HW)
    return pl.pallas_call(
        kernel,
        out_shape=jax.ShapeDtypeStruct((N, C, 1), F32),
        grid=(N, HW // THW),
        in_specs=[pl.BlockSpec((1, C, THW), lambda n, j: (n, 0, j)),
                  pl.BlockSpec((mid, C), lambda n, j: (0, 0)),
                  pl.BlockSpec((mid, 1), lambda n, j: (0, 0)),
                  pl.BlockSpec((C, mid), lambda n, j: (0, 0)),
                  pl.BlockSpec((C, 1), lambda n, j: (0, 0))],
        out_specs=pl.BlockSpec((1, C, 1), lambda n, j: (n, 0, 0)),
        scratch_shapes=[pltpu.VMEM((C, 1), F32),
                        pltpu.VMEM((C, 1), F32)],
        compiler_params=pltpu.CompilerParams(
            dimension_semantics=("parallel", "arbitrary")),
    )


@functools.lru_cache(maxsize=None)
def _build_apply(N, C, HW, THW, x_dtype_name):
    dtype = jnp.dtype(x_dtype_name)
    return pl.pallas_call(
        _apply_kernel,
        out_shape=jax.ShapeDtypeStruct((N, C, HW), dtype),
        grid=(N, HW // THW),
        in_specs=[pl.BlockSpec((1, C, THW), lambda n, j: (n, 0, j)),
                  pl.BlockSpec((1, C, 1), lambda n, j: (n, 0, 0))],
        out_specs=pl.BlockSpec((1, C, THW), lambda n, j: (n, 0, j)),
        compiler_params=pltpu.CompilerParams(
            dimension_semantics=("parallel", "parallel")),
    )


# ----------------------------------------------------------------------------
# Tiling helpers
# ----------------------------------------------------------------------------
def _divisors(n):
    out, i = set(), 1
    while i * i <= n:
        if n % i == 0:
            out.add(i)
            out.add(n // i)
        i += 1
    return sorted(out)


def _pick_spatial_tile(hw, c, itemsize, max_bytes=_TILE_BYTES):
    """Byte-aware spatial tile: biggest divisor of HW such that the x block is
    ~max_bytes, preferring lane-dense (multiple of 128) tiles."""
    max_thw = max(1, min(hw, max_bytes // max(1, c * itemsize)))
    divs = [d for d in _divisors(hw) if d <= max_thw]
    lane_dense = [d for d in divs if d % 128 == 0]
    if lane_dense:
        return max(lane_dense)
    # TODO(synk): for HW with no multiple-of-128 divisor (7x7, 14x14, ...) pad
    # the spatial axis to a multiple of 128 so stores stay lane-dense.
    return max(divs)


# ----------------------------------------------------------------------------
# Forward pass (wrap in a single jax.jit at the call site)
# ----------------------------------------------------------------------------
def channels_attention(x, params, *, force_multipass=False):
    """x: (N, C, H, W).  Returns x * sigmoid(MLP(avgpool(x)) + MLP(maxpool(x)))."""
    N, C, H, W = x.shape
    HW = H * W
    mid = params["w1"].shape[1]

    # Column-form MLP operands (transposed once at the XLA level; tiny arrays).
    w1t = params["w1"].T                        # (mid, C)
    b1c = params["b1"].reshape(mid, 1)          # (mid, 1)
    w2t = params["w2"].T                        # (C, mid)
    b2c = params["b2"].reshape(C, 1)            # (C, 1)

    x3 = x.reshape(N, C, HW)                    # free at the HBM level

    if not force_multipass and C * HW * 4 <= _FUSED_SLAB_F32_BYTES:
        # Single fused kernel: one HBM read of x, one write of out.
        out3 = _build_fused(N, C, HW, mid, x.dtype.name)(x3, w1t, b1c, w2t, b2c)
    else:
        # Two-pass fallback for slabs that don't fit VMEM.
        THW = _pick_spatial_tile(HW, C, x.dtype.itemsize)
        att = _build_pool_mlp(N, C, HW, THW, mid)(x3, w1t, b1c, w2t, b2c)
        out3 = _build_apply(N, C, HW, THW, x.dtype.name)(x3, att)

    return out3.reshape(N, C, H, W)


# ----------------------------------------------------------------------------
# Pure-JAX reference (for correctness check only)
# ----------------------------------------------------------------------------
def _reference(x, params):
    avg = jnp.mean(x.astype(F32), axis=(2, 3))
    mx = jnp.max(x.astype(F32), axis=(2, 3))

    def mlp(v):
        h = jnp.maximum(v @ params["w1"] + params["b1"], 0.0)
        return h @ params["w2"] + params["b2"]

    att = jax.nn.sigmoid(mlp(avg) + mlp(mx))
    return (x.astype(F32) * att[:, :, None, None]).astype(x.dtype)


if __name__ == "__main__":
    key = jax.random.PRNGKey(0)
    kx, k1, k2, k3, k4 = jax.random.split(key, 5)

    # Shapes consistent with the module (reduction_ratio=16 needs C >= 16;
    # C=128 keeps the channel axis lane-dense).
    N, C, H, W = 2, 128, 16, 16
    rr = 16
    mid = C // rr

    x = jax.random.normal(kx, (N, C, H, W), F32)
    params = {
        "w1": jax.random.normal(k1, (C, mid), F32) * (1.0 / (C ** 0.5)),
        "b1": jax.random.normal(k2, (mid,), F32) * 0.1,
        "w2": jax.random.normal(k3, (mid, C), F32) * (1.0 / (mid ** 0.5)),
        "b2": jax.random.normal(k4, (C,), F32) * 0.1,
    }

    ref = _reference(x, params)

    # Fused single-kernel path (default for this shape).
    fwd = jax.jit(channels_attention)
    out = jax.block_until_ready(fwd(x, params))
    assert out.shape == (N, C, H, W), out.shape
    err = float(jnp.max(jnp.abs(out - ref)))
    assert err < 1e-4, f"fused path max abs error {err}"

    # Multi-pass fallback path (pool+MLP fused kernel, then apply kernel).
    fwd_mp = jax.jit(functools.partial(channels_attention, force_multipass=True))
    out_mp = jax.block_until_ready(fwd_mp(x, params))
    err_mp = float(jnp.max(jnp.abs(out_mp - ref)))
    assert err_mp < 1e-4, f"multipass path max abs error {err_mp}"

    print("KERNEL_OK")
</pallas_src>

<mosaic_0001>
module attributes {stable_mosaic.version = 11 : i64} {
  func.func @_fused_kernel(%arg0: i32, %arg1: memref<1x128x256xf32, #tpu.memory_space<vmem>>, %arg2: memref<8x128xf32, #tpu.memory_space<vmem>>, %arg3: memref<8x1xf32, #tpu.memory_space<vmem>>, %arg4: memref<128x8xf32, #tpu.memory_space<vmem>>, %arg5: memref<128x1xf32, #tpu.memory_space<vmem>>, %arg6: memref<1x128x256xf32, #tpu.memory_space<vmem>>) attributes {dimension_semantics = [#tpu.dimension_semantics<parallel>], iteration_bounds = array<i64: 2>, scalar_prefetch = 0 : i64, scratch_operands = 0 : i64, tpu.core_type = #tpu.core_type<tc>, window_params = [{transform_indices = @transform_0, window_bounds = array<i64: 1, 128, 256>}, {pipeline_mode = #tpu.pipeline_mode<synchronous>, transform_indices = @transform_1, window_bounds = array<i64: 8, 128>}, {pipeline_mode = #tpu.pipeline_mode<synchronous>, transform_indices = @transform_2, window_bounds = array<i64: 8, 1>}, {pipeline_mode = #tpu.pipeline_mode<synchronous>, transform_indices = @transform_3, window_bounds = array<i64: 128, 8>}, {pipeline_mode = #tpu.pipeline_mode<synchronous>, transform_indices = @transform_4, window_bounds = array<i64: 128, 1>}, {transform_indices = @transform_5, window_bounds = array<i64: 1, 128, 256>}]} {
    %c0 = arith.constant 0 : index
    %c0_0 = arith.constant 0 : index
    %c0_1 = arith.constant 0 : index
    %0 = vector.load %arg1[%c0, %c0_0, %c0_1] : memref<1x128x256xf32, #tpu.memory_space<vmem>>, vector<1x128x256xf32>
    %1 = vector.shape_cast %0 : vector<1x128x256xf32> to vector<128x256xf32>
    %cst = arith.constant dense<0.000000e+00> : vector<128xf32>
    %2 = vector.multi_reduction <add>, %1, %cst [1] : vector<128x256xf32> to vector<128xf32>
    %3 = vector.shape_cast %2 : vector<128xf32> to vector<128x1xf32>
    %cst_2 = arith.constant 3.906250e-03 : f32
    %4 = vector.broadcast %cst_2 : f32 to vector<128x1xf32>
    %5 = arith.mulf %3, %4 : vector<128x1xf32>
    %cst_3 = arith.constant dense<0xFF800000> : vector<128xf32>
    %6 = vector.multi_reduction <maximumf>, %1, %cst_3 [1] : vector<128x256xf32> to vector<128xf32>
    %7 = vector.shape_cast %6 : vector<128xf32> to vector<128x1xf32>
    %c0_4 = arith.constant 0 : index
    %c0_5 = arith.constant 0 : index
    %8 = vector.load %arg2[%c0_4, %c0_5] : memref<8x128xf32, #tpu.memory_space<vmem>>, vector<8x128xf32>
    %c0_6 = arith.constant 0 : index
    %c0_7 = arith.constant 0 : index
    %9 = vector.load %arg3[%c0_6, %c0_7] : memref<8x1xf32, #tpu.memory_space<vmem>>, vector<8x1xf32>
    %c0_8 = arith.constant 0 : index
    %c0_9 = arith.constant 0 : index
    %10 = vector.load %arg4[%c0_8, %c0_9] : memref<128x8xf32, #tpu.memory_space<vmem>>, vector<128x8xf32>
    %c0_10 = arith.constant 0 : index
    %c0_11 = arith.constant 0 : index
    %11 = vector.load %arg5[%c0_10, %c0_11] : memref<128x1xf32, #tpu.memory_space<vmem>>, vector<128x1xf32>
    %cst_12 = arith.constant dense<0.000000e+00> : vector<8x1xf32>
    %12 = tpu.matmul %8, %5, %cst_12 {dimension_numbers = #tpu.dot_dimension_numbers<[1], [0], [0], [1], [0, 0, 1, 1], [], []>} : vector<8x128xf32>, vector<128x1xf32>, vector<8x1xf32> -> vector<8x1xf32>
    %13 = arith.addf %12, %9 : vector<8x1xf32>
    %cst_13 = arith.constant 0.000000e+00 : f32
    %14 = vector.broadcast %cst_13 : f32 to vector<8x1xf32>
    %15 = arith.maximumf %13, %14 : vector<8x1xf32>
    %cst_14 = arith.constant dense<0.000000e+00> : vector<128x1xf32>
    %16 = tpu.matmul %10, %15, %cst_14 {dimension_numbers = #tpu.dot_dimension_numbers<[1], [0], [0], [1], [0, 0, 1, 1], [], []>} : vector<128x8xf32>, vector<8x1xf32>, vector<128x1xf32> -> vector<128x1xf32>
    %17 = arith.addf %16, %11 : vector<128x1xf32>
    %cst_15 = arith.constant dense<0.000000e+00> : vector<8x1xf32>
    %18 = tpu.matmul %8, %7, %cst_15 {dimension_numbers = #tpu.dot_dimension_numbers<[1], [0], [0], [1], [0, 0, 1, 1], [], []>} : vector<8x128xf32>, vector<128x1xf32>, vector<8x1xf32> -> vector<8x1xf32>
    %19 = arith.addf %18, %9 : vector<8x1xf32>
    %cst_16 = arith.constant 0.000000e+00 : f32
    %20 = vector.broadcast %cst_16 : f32 to vector<8x1xf32>
    %21 = arith.maximumf %19, %20 : vector<8x1xf32>
    %cst_17 = arith.constant dense<0.000000e+00> : vector<128x1xf32>
    %22 = tpu.matmul %10, %21, %cst_17 {dimension_numbers = #tpu.dot_dimension_numbers<[1], [0], [0], [1], [0, 0, 1, 1], [], []>} : vector<128x8xf32>, vector<8x1xf32>, vector<128x1xf32> -> vector<128x1xf32>
    %23 = arith.addf %22, %11 : vector<128x1xf32>
    %24 = arith.addf %17, %23 : vector<128x1xf32>
    %25 = arith.negf %24 : vector<128x1xf32>
    %26 = math.exp %25 : vector<128x1xf32>
    %cst_18 = arith.constant 1.000000e+00 : f32
    %27 = vector.broadcast %cst_18 : f32 to vector<128x1xf32>
    %28 = arith.addf %27, %26 : vector<128x1xf32>
    %29 = arith.divf %27, %28 : vector<128x1xf32>
    %30 = vector.broadcast %29 : vector<128x1xf32> to vector<128x256xf32>
    %31 = arith.mulf %1, %30 : vector<128x256xf32>
    %c0_19 = arith.constant 0 : index
    %c0_20 = arith.constant 0 : index
    %c0_21 = arith.constant 0 : index
    %32 = vector.load %arg6[%c0_19, %c0_20, %c0_21] : memref<1x128x256xf32, #tpu.memory_space<vmem>>, vector<1x128x256xf32>
    %33 = vector.shape_cast %32 : vector<1x128x256xf32> to vector<128x256xf32>
    %34 = vector.shape_cast %31 : vector<128x256xf32> to vector<1x128x256xf32>
    tpu.vector_store %arg6[%c0_19, %c0_20, %c0_21], %34 {strides = array<i32>} : memref<1x128x256xf32, #tpu.memory_space<vmem>>, vector<1x128x256xf32>,
    return
  }
  func.func @transform_0(%arg0: i32) -> (i32, i32, i32) {
    %c0_i32 = arith.constant 0 : i32
    %c0_i32_0 = arith.constant 0 : i32
    %c0_i32_1 = arith.constant 0 : i32
    return %arg0, %c0_i32, %c0_i32_0 : i32, i32, i32
  }
  func.func @transform_1(%arg0: i32) -> (i32, i32) {
    %c0_i32 = arith.constant 0 : i32
    %c0_i32_0 = arith.constant 0 : i32
    %c0_i32_1 = arith.constant 0 : i32
    return %c0_i32, %c0_i32_0 : i32, i32
  }
  func.func @transform_2(%arg0: i32) -> (i32, i32) {
    %c0_i32 = arith.constant 0 : i32
    %c0_i32_0 = arith.constant 0 : i32
    %c0_i32_1 = arith.constant 0 : i32
    return %c0_i32, %c0_i32_0 : i32, i32
  }
  func.func @transform_3(%arg0: i32) -> (i32, i32) {
    %c0_i32 = arith.constant 0 : i32
    %c0_i32_0 = arith.constant 0 : i32
    %c0_i32_1 = arith.constant 0 : i32
    return %c0_i32, %c0_i32_0 : i32, i32
  }
  func.func @transform_4(%arg0: i32) -> (i32, i32) {
    %c0_i32 = arith.constant 0 : i32
    %c0_i32_0 = arith.constant 0 : i32
    %c0_i32_1 = arith.constant 0 : i32
    return %c0_i32, %c0_i32_0 : i32, i32
  }
  func.func @transform_5(%arg0: i32) -> (i32, i32, i32) {
    %c0_i32 = arith.constant 0 : i32
    %c0_i32_0 = arith.constant 0 : i32
    %c0_i32_1 = arith.constant 0 : i32
    return %arg0, %c0_i32, %c0_i32_0 : i32, i32, i32
  }
}

</mosaic_0001>

<bundles_post_ra>
// kernel: channels_attention.1
= control target key start
LH: loop header
LB: loop body
LE: loop exit
PB: predicated region body
PF: predicated region fallthrough
CT: control target
= control target key end

     0   :  { %s1578_s18 = smov 0   ;;  %s2044_s0 = inlined_call_operand.vmem [shape: f32[2,128,256], index: 0, kind: input, shape index: {}]   ;;  %s2045_s1 = inlined_call_operand.vmem [shape: f32[8,128], index: 1, kind: input, shape index: {}]   ;;  %s2046_s2 = inlined_call_operand.vmem [shape: f32[8,1], index: 2, kind: input, shape index: {}]   ;;  %s2047_s3 = inlined_call_operand.vmem [shape: f32[128,8], index: 3, kind: input, shape index: {}]   ;;  %s2048_s4 = inlined_call_operand.vmem [shape: f32[128,1], index: 4, kind: input, shape index: {}]   ;;  %s2049_s5 = inlined_call_operand.vmem [shape: f32[2,128,256], index: 5, kind: output, shape index: {}]  }
   0x1 LB: > { %s1195_s19 = sadd.s32 4294967295, %s1543_s18   ;;  %p1199_p0 = scmp.ge.s32.totalorder %s1543_s18, 1  ;;  %s1543_s18 = sphi %s1578_s18, %s15_s18  }
   0x2   : > { %p187_p1 = scmp.lt.s32.totalorder %s1543_s18, 3 }
   0x4   : > { %p188_p2 = pnand %p1199_p0, %p187_p1 }
   0x6   : > { %191 = sbr.rel (%p188_p2) target bundleno = 1018 (0x3fa), region = 40 }
   0xb   : > { %p215_p3 = scmp.lt.s32.totalorder %s1195_s19, 1  ;;  %v1545_v28 = vmov 0.0   ;;  %vm1546_vm0 = vmmov 0   ;;  %vm474_vm1 = vcmask 64512  }
   0xc   : > { %1324 = vmatprep.subr.mxu0 %v1545_v28  ;;  %1356 = vmatprep.mubr.msk.f32.mxu0 %vm1546_vm0, %v1545_v28 }
   0xd   : > { %s2054_s19 = smov (!%p215_p3, %s1195_s19), 1 }
   0xe   : > { %s1254_s20 = sshll.u32 %s2054_s19, 8 }
   0xf   : > { %s1594_s23 = scalar_lea.vmem %s2044_s0, %s1254_s20  ;;  %s1975_s6 = scalar_lea.vmem %s2049_s5, %s1254_s20 }
  0x10   : > { %v1597_v0 = vld [vmem:[%s1594_s23 + $0xf0] sm:$0xff]  ;;  %v1600_v1 = vld [vmem:[%s1594_s23 + $0xf8] sm:$0xff]  ;;  %v1603_v2 = vld [vmem:[%s1594_s23 + $0xe0] sm:$0xff] }
  0x11   : > { %v302_v3 = vadd.f32 %v1600_v1, %v1597_v0  ;;  %v1608_v4 = vld [vmem:[%s1594_s23 + $0xe8] sm:$0xff]  ;;  %v1611_v5 = vld [vmem:[%s1594_s23 + $0xd0] sm:$0xff]  ;;  %v1614_v6 = vld [vmem:[%s1594_s23 + $0xd8] sm:$0xff]  ;;  %v366_v49 = vmax.f32 %v1597_v0, %v1600_v1 }
  0x12   : > { %v296_v7 = vadd.f32 %v1614_v6, %v1611_v5  ;;  %v1619_v8 = vld [vmem:[%s1594_s23 + $0xc0] sm:$0xff]  ;;  %v1622_v9 = vld [vmem:[%s1594_s23 + $0xc8] sm:$0xff]  ;;  %v299_v10 = vadd.f32 %v1608_v4, %v1603_v2  ;;  %v1629_v12 = vld [vmem:[%s1594_s23 + $0xb0] sm:$0xff]  ;;  %v363_v50 = vmax.f32 %v1603_v2, %v1608_v4  ;;  %v360_v51 = vmax.f32 %v1611_v5, %v1614_v6 }
  0x13   : > { %303 = vadd.xlane.f32.xlu0 %v302_v3  ;;  %v293_v11 = vadd.f32 %v1622_v9, %v1619_v8  ;;  %v1632_v13 = vld [vmem:[%s1594_s23 + $0xb8] sm:$0xff]  ;;  %v1635_v14 = vld [vmem:[%s1594_s23 + $0xa0] sm:$0xff]  ;;  %v1638_v15 = vld [vmem:[%s1594_s23 + $0xa8] sm:$0xff]  ;;  %v357_v52 = vmax.f32 %v1619_v8, %v1622_v9 }
  0x14   : > { %297 = vadd.xlane.f32.xlu1 %v296_v7  ;;  %v290_v16 = vadd.f32 %v1632_v13, %v1629_v12  ;;  %v287_v17 = vadd.f32 %v1638_v15, %v1635_v14  ;;  %v1645_v18 = vld [vmem:[%s1594_s23 + $0x90] sm:$0xff]  ;;  %v1648_v19 = vld [vmem:[%s1594_s23 + $0x98] sm:$0xff]  ;;  %v241_v20 = vld [vmem:[%s1594_s23 + $0x80] sm:$0xff]  ;;  %v354_v53 = vmax.f32 %v1629_v12, %v1632_v13  ;;  %v351_v54 = vmax.f32 %v1635_v14, %v1638_v15 }
  0x15   : > { %v242_v21 = vld [vmem:[%s1594_s23 + $0x88] sm:$0xff]  ;;  %v284_v22 = vadd.f32 %v1648_v19, %v1645_v18  ;;  %v239_v24 = vld [vmem:[%s1594_s23 + $0x70] sm:$0xff]  ;;  %v240_v25 = vld [vmem:[%s1594_s23 + $0x78] sm:$0xff]  ;;  %v348_v55 = vmax.f32 %v1645_v18, %v1648_v19 }
  0x16   : > { %v281_v23 = vadd.f32 %v242_v21, %v241_v20  ;;  %v237_v26 = vld [vmem:[%s1594_s23 + $0x60] sm:$0xff]  ;;  %v238_v27 = vld [vmem:[%s1594_s23 + $0x68] sm:$0xff]  ;;  %v278_v29 = vadd.f32 %v240_v25, %v239_v24  ;;  %v1660_v31 = vld [vmem:[%s1594_s23 + $0x50] sm:$0xff]  ;;  %v345_v56 = vmax.f32 %v241_v20, %v242_v21  ;;  %v342_v57 = vmax.f32 %v239_v24, %v240_v25 }
  0x17   : > { %300 = vadd.xlane.f32.xlu0 %v299_v10  ;;  %v275_v30 = vadd.f32 %v238_v27, %v237_v26  ;;  %v1663_v32 = vld [vmem:[%s1594_s23 + $0x58] sm:$0xff]  ;;  %v1666_v33 = vld [vmem:[%s1594_s23 + $0x40] sm:$0xff]  ;;  %v1669_v34 = vld [vmem:[%s1594_s23 + $0x48] sm:$0xff]  ;;  %v339_v58 = vmax.f32 %v237_v26, %v238_v27 }
  0x18   : > { %294 = vadd.xlane.f32.xlu1 %v293_v11  ;;  %2051 = vst [vmem:[#allocation2_spill] sm:$0xff] %v1669_v34  ;;  %v272_v35 = vadd.f32 %v1663_v32, %v1660_v31  ;;  %v269_v36 = vadd.f32 %v1669_v34, %v1666_v33  ;;  %v1676_v37 = vld [vmem:[%s1594_s23 + $0x30] sm:$0xff]  ;;  %v1679_v38 = vld [vmem:[%s1594_s23 + $0x38] sm:$0xff]  ;;  %v1682_v39 = vld [vmem:[%s1594_s23 + $0x20] sm:$0xff]  ;;  %v336_v59 = vmax.f32 %v1660_v31, %v1663_v32 }
  0x19   : > { %v1685_v40 = vld [vmem:[%s1594_s23 + $0x28] sm:$0xff]  ;;  %v266_v41 = vadd.f32 %v1679_v38, %v1676_v37  ;;  %v1692_v43 = vld [vmem:[%s1594_s23 + $0x10] sm:$0xff]  ;;  %v1695_v44 = vld [vmem:[%s1594_s23 + $0x18] sm:$0xff]  ;;  %v333_v60 = vmax.f32 %v1666_v33, %v1669_v34  ;;  %v330_v61 = vmax.f32 %v1676_v37, %v1679_v38 }
  0x1a   : > { %v263_v42 = vadd.f32 %v1685_v40, %v1682_v39  ;;  %v1698_v45 = vld [vmem:[%s1594_s23] sm:$0xff]  ;;  %v1701_v46 = vld [vmem:[%s1594_s23 + $0x8] sm:$0xff]  ;;  %v260_v47 = vadd.f32 %v1695_v44, %v1692_v43  ;;  %v327_v62 = vmax.f32 %v1682_v39, %v1685_v40  ;;  %v324_v63 = vmax.f32 %v1692_v43, %v1695_v44 }
  0x1b   : > { %291 = vadd.xlane.f32.xlu0 %v290_v16  ;;  %v257_v48 = vadd.f32 %v1701_v46, %v1698_v45  ;;  %v321_v0 = vmax.f32 %v1698_v45, %v1701_v46 }
  0x1c   : > { %288 = vadd.xlane.f32.xlu1 %v287_v17 }
  0x1f   : > { %285 = vadd.xlane.f32.xlu0 %v284_v22 }
  0x20   : > { %282 = vadd.xlane.f32.xlu1 %v281_v23 }
  0x23   : > { %279 = vadd.xlane.f32.xlu0 %v278_v29 }
  0x24   : > { %276 = vadd.xlane.f32.xlu1 %v275_v30 }
  0x27   : > { %273 = vadd.xlane.f32.xlu0 %v272_v35 }
  0x28   : > { %270 = vadd.xlane.f32.xlu1 %v269_v36 }
  0x2b   : > { %267 = vadd.xlane.f32.xlu0 %v266_v41 }
  0x2c   : > { %264 = vadd.xlane.f32.xlu1 %v263_v42 }
  0x2f   : > { %261 = vadd.xlane.f32.xlu0 %v260_v47 }
  0x30   : > { %258 = vadd.xlane.f32.xlu1 %v257_v48 }
  0x33   : > { %367 = vmax.xlane.f32.xlu0 %v366_v49 }
  0x34   : > { %364 = vmax.xlane.f32.xlu1 %v363_v50 }
  0x37   : > { %361 = vmax.xlane.f32.xlu0 %v360_v51 }
  0x38   : > { %358 = vmax.xlane.f32.xlu1 %v357_v52 }
  0x3b   : > { %355 = vmax.xlane.f32.xlu0 %v354_v53 }
  0x3c   : > { %352 = vmax.xlane.f32.xlu1 %v351_v54  ;;  %v1752_v54 = vld [vmem:[%s2045_s1] sm:$0xff] }
  0x3f   : > { %349 = vmax.xlane.f32.xlu0 %v348_v55  ;;  %v371_v55 = vld [vmem:[%s2047_s3] sm:$0xff] }
  0x40   : > { %346 = vmax.xlane.f32.xlu1 %v345_v56  ;;  %1361 = vmatprep.mubr.msk.f32.mxu1 %vm474_vm1, %v371_v55 }
  0x43   : > { %343 = vmax.xlane.f32.xlu0 %v342_v57 }
  0x44   : > { %340 = vmax.xlane.f32.xlu1 %v339_v58 }
  0x47   : > { %337 = vmax.xlane.f32.xlu0 %v336_v59  ;;  %v1764_v59 = vld [vmem:[%s2046_s2] sm:$0xff] }
  0x48   : > { %334 = vmax.xlane.f32.xlu1 %v333_v60 }
  0x4b   : > { %331 = vmax.xlane.f32.xlu0 %v330_v61 }
  0x4c   : > { %328 = vmax.xlane.f32.xlu1 %v327_v62 }
  0x4f   : > { %325 = vmax.xlane.f32.xlu0 %v324_v63 }
  0x50   : > { %322 = vmax.xlane.f32.xlu1 %v321_v0 }
  0x9c   : > { %v304_v1 = vpop.xlane.xlu0 %303 }
  0x9d   : > { %v320_v2 = vmul.f32 0.00390625, %v304_v1  ;;  %v298_v3 = vpop.xlane.xlu1 %297 }
  0x9e   : > { %v318_v9 = vmul.f32 0.00390625, %v298_v3  ;;  %v1775_v3 = vld [vmem:[%s2047_s3 + $0x10] sm:$0xff] }
  0x9f   : > { %1325 = vmatpush3.msra.mxu0 %v320_v2  ;;  %v1770_v2 = vld [vmem:[%s2047_s3 + $0x8] sm:$0xff] }
  0xa0   : > { %v301_v4 = vpop.xlane.xlu0 %300  ;;  %1326 = vmatprep.subr.mxu0 %v1545_v28 }
  0xa1   : > { %v319_v7 = vmul.f32 0.00390625, %v301_v4  ;;  %v295_v8 = vpop.xlane.xlu1 %294 }
  0xa2   : > { %v317_v10 = vmul.f32 0.00390625, %v295_v8  ;;  %v1791_v8 = vld [vmem:[%s2047_s3 + $0x20] sm:$0xff] }
  0xa3   : > { %1327 = vmatpush3.msra.mxu0 %v319_v7  ;;  %v1785_v7 = vld [vmem:[%s2047_s3 + $0x18] sm:$0xff] }
  0xa4   : > { %1328 = vmatprep.subr.mxu0 %v1545_v28  ;;  %v292_v11 = vpop.xlane.xlu0 %291 }
  0xa5   : > { %1329 = vmatpush3.msra.mxu0 %v318_v9  ;;  %v316_v16 = vmul.f32 0.00390625, %v292_v11  ;;  %v289_v17 = vpop.xlane.xlu1 %288  ;;  %v1801_v11 = vld [vmem:[%s2047_s3 + $0x28] sm:$0xff] }
  0xa6   : > { %1330 = vmatprep.subr.mxu0 %v1545_v28  ;;  %v315_v20 = vmul.f32 0.00390625, %v289_v17 }
  0xa7   : > { %1331 = vmatpush3.msra.mxu0 %v317_v10 }
  0xa8   : > { %1332 = vmatprep.subr.mxu0 %v1545_v28  ;;  %v286_v21 = vpop.xlane.xlu0 %285 }
  0xa9   : > { %1333 = vmatpush3.msra.mxu0 %v316_v16  ;;  %v314_v22 = vmul.f32 0.00390625, %v286_v21  ;;  %v283_v23 = vpop.xlane.xlu1 %282  ;;  %v1807_v16 = vld [vmem:[%s2047_s3 + $0x30] sm:$0xff]  ;;  %v1823_v21 = vld [vmem:[%s2047_s3 + $0x40] sm:$0xff] }
  0xaa   : > { %1334 = vmatprep.subr.mxu0 %v1545_v28  ;;  %v313_v24 = vmul.f32 0.00390625, %v283_v23  ;;  %v1833_v23 = vld [vmem:[%s2047_s3 + $0x48] sm:$0xff] }
  0xab   : > { %1335 = vmatpush3.msra.mxu0 %v315_v20  ;;  %v1817_v20 = vld [vmem:[%s2047_s3 + $0x38] sm:$0xff] }
  0xac   : > { %1336 = vmatprep.subr.mxu0 %v1545_v28  ;;  %v280_v25 = vpop.xlane.xlu0 %279 }
  0xad   : > { %1337 = vmatpush3.msra.mxu0 %v314_v22  ;;  %v312_v26 = vmul.f32 0.00390625, %v280_v25  ;;  %v277_v27 = vpop.xlane.xlu1 %276 }
  0xae   : > { %1338 = vmatprep.subr.mxu0 %v1545_v28  ;;  %v311_v29 = vmul.f32 0.00390625, %v277_v27  ;;  %v382_v27 = vld [vmem:[%s2047_s3 + $0x58] sm:$0xff] }
  0xaf   : > { %1339 = vmatpush3.msra.mxu0 %v313_v24  ;;  %v381_v24 = vld [vmem:[%s2047_s3 + $0x50] sm:$0xff] }
  0xb0   : > { %1340 = vmatprep.subr.mxu0 %v1545_v28  ;;  %v274_v30 = vpop.xlane.xlu0 %273 }
  0xb1   : > { %1341 = vmatpush3.msra.mxu0 %v312_v26  ;;  %v310_v35 = vmul.f32 0.00390625, %v274_v30  ;;  %v271_v36 = vpop.xlane.xlu1 %270 }
  0xb2   : > { %1342 = vmatprep.subr.mxu0 %v1545_v28  ;;  %v309_v41 = vmul.f32 0.00390625, %v271_v36 }
  0xb3   : > { %1343 = vmatpush3.msra.mxu0 %v311_v29  ;;  %v383_v29 = vld [vmem:[%s2047_s3 + $0x60] sm:$0xff] }
  0xb4   : > { %1344 = vmatprep.subr.mxu0 %v1545_v28  ;;  %v268_v42 = vpop.xlane.xlu0 %267 }
  0xb5   : > { %1345 = vmatpush3.msra.mxu0 %v310_v35  ;;  %v308_v47 = vmul.f32 0.00390625, %v268_v42  ;;  %v265_v48 = vpop.xlane.xlu1 %264  ;;  %v384_v35 = vld [vmem:[%s2047_s3 + $0x68] sm:$0xff]  ;;  %v386_v42 = vld [vmem:[%s2047_s3 + $0x78] sm:$0xff] }
  0xb6   : > { %1346 = vmatprep.subr.mxu0 %v1545_v28  ;;  %v307_v49 = vmul.f32 0.00390625, %v265_v48 }
  0xb7   : > { %1347 = vmatpush3.msra.mxu0 %v309_v41  ;;  %v385_v41 = vld [vmem:[%s2047_s3 + $0x70] sm:$0xff] }
  0xb8   : > { %1348 = vmatprep.subr.mxu0 %v1545_v28  ;;  %v262_v50 = vpop.xlane.xlu0 %261 }
  0xb9   : > { %1349 = vmatpush3.msra.mxu0 %v308_v47  ;;  %v306_v51 = vmul.f32 0.00390625, %v262_v50  ;;  %v259_v52 = vpop.xlane.xlu1 %258 }
  0xba   : > { %1350 = vmatprep.subr.mxu0 %v1545_v28  ;;  %v305_v53 = vmul.f32 0.00390625, %v259_v52 }
  0xbb   : > { %1351 = vmatpush3.msra.mxu0 %v307_v49 }
  0xbc   : > { %1352 = vmatprep.subr.mxu0 %v1545_v28  ;;  %v368_v56 = vpop.xlane.xlu0 %367 }
  0xbd   : > { %1353 = vmatpush3.msra.mxu0 %v306_v51  ;;  %v365_v57 = vpop.xlane.xlu1 %364 }
  0xbe   : > { %1354 = vmatprep.subr.mxu0 %v1545_v28 }
  0xbf   : > { %1355 = vmatpush3.msra.mxu0 %v305_v53 }
  0xc0   : > { %1357 = vmatmul.mubr.f32.vlgmr.msra.gmra.mxu0 %v1752_v54  ;;  %v362_v58 = vpop.xlane.xlu0 %361 }
  0xc1   : > { %1422 = vmatprep.mubr.msk.f32.mxu0 %vm474_vm1, %v371_v55  ;;  %v359_v60 = vpop.xlane.xlu1 %358 }
  0xc4   : > { %v356_v1 = vpop.xlane.xlu0 %355 }
  0xc5   : > { %v353_v4 = vpop.xlane.xlu1 %352 }
  0xc8   : > { %v350_v9 = vpop.xlane.xlu0 %349 }
  0xc9   : > { %v347_v10 = vpop.xlane.xlu1 %346 }
  0xcc   : > { %v344_v17 = vpop.xlane.xlu0 %343 }
  0xcd   : > { %v341_v22 = vpop.xlane.xlu1 %340 }
  0xd0   : > { %v338_v25 = vpop.xlane.xlu0 %337 }
  0xd1   : > { %v335_v26 = vpop.xlane.xlu1 %334 }
  0xd4   : > { %v332_v30 = vpop.xlane.xlu0 %331 }
  0xd5   : > { %v329_v36 = vpop.xlane.xlu1 %328 }
  0xd8   : > { %v326_v47 = vpop.xlane.xlu0 %325 }
  0xd9   : > { %v323_v48 = vpop.xlane.xlu1 %322 }
 0x180   : > { %v469_v61 = vpop.f32.mrf.mxu0 }
 0x181   : > { %v470_v62 = vadd.f32 %v469_v61, %v1764_v59 }
 0x182   : > { %v1358_v63 = vpop.f32.mrf.mxu0 }
 0x183   : > { %v473_v0 = vmax.f32 %v470_v62, 0.0 }
 0x185   : > { %1359 = vmatprep.subr.mxu1 %v473_v0 }
 0x186   : > { %1360 = vmatpush3.msra.mxu1 %v473_v0 }
 0x187   : > { %1362 = vmatmul.mubr.msk.f32.vlgmr.msra.gmra.mxu1 %vm474_vm1, %v1770_v2  ;;  %1385 = vmatprep.subr.mxu1 %v1545_v28 }
 0x188   : > { %1386 = vmatpush3.msra.mxu1 %v368_v56  ;;  %1364 = vmatprep.mubr.msk.f32.mxu1 %vm474_vm1, %v1775_v3 }
 0x189   : > { %1387 = vmatprep.subr.mxu1 %v1545_v28 }
 0x18a   : > { %1388 = vmatpush3.msra.mxu1 %v365_v57 }
 0x18b   : > { %1365 = vmatmul.mubr.msk.f32.gmra.mxu1 %vm474_vm1, %v1785_v7  ;;  %1389 = vmatprep.subr.mxu1 %v1545_v28 }
 0x18c   : > { %1390 = vmatpush3.msra.mxu1 %v362_v58  ;;  %1367 = vmatprep.mubr.msk.f32.mxu1 %vm474_vm1, %v1791_v8 }
 0x18d   : > { %1391 = vmatprep.subr.mxu1 %v1545_v28 }
 0x18e   : > { %1392 = vmatpush3.msra.mxu1 %v359_v60 }
 0x18f   : > { %1368 = vmatmul.mubr.msk.f32.gmra.mxu1 %vm474_vm1, %v1801_v11  ;;  %1393 = vmatprep.subr.mxu1 %v1545_v28 }
 0x190   : > { %1394 = vmatpush3.msra.mxu1 %v356_v1  ;;  %1370 = vmatprep.mubr.msk.f32.mxu1 %vm474_vm1, %v1807_v16 }
 0x191   : > { %1395 = vmatprep.subr.mxu1 %v1545_v28 }
 0x192   : > { %1396 = vmatpush3.msra.mxu1 %v353_v4 }
 0x193   : > { %1371 = vmatmul.mubr.msk.f32.gmra.mxu1 %vm474_vm1, %v1817_v20  ;;  %1397 = vmatprep.subr.mxu1 %v1545_v28 }
 0x194   : > { %1398 = vmatpush3.msra.mxu1 %v350_v9  ;;  %1373 = vmatprep.mubr.msk.f32.mxu1 %vm474_vm1, %v1823_v21 }
 0x195   : > { %1399 = vmatprep.subr.mxu1 %v1545_v28 }
 0x196   : > { %1400 = vmatpush3.msra.mxu1 %v347_v10 }
 0x197   : > { %1374 = vmatmul.mubr.msk.f32.gmra.mxu1 %vm474_vm1, %v1833_v23  ;;  %1401 = vmatprep.subr.mxu1 %v1545_v28 }
 0x198   : > { %1402 = vmatpush3.msra.mxu1 %v344_v17  ;;  %1376 = vmatprep.mubr.msk.f32.mxu1 %vm474_vm1, %v381_v24 }
 0x199   : > { %1403 = vmatprep.subr.mxu1 %v1545_v28 }
 0x19a   : > { %1404 = vmatpush3.msra.mxu1 %v341_v22 }
 0x19b   : > { %1377 = vmatmul.mubr.msk.f32.gmra.mxu1 %vm474_vm1, %v382_v27  ;;  %1405 = vmatprep.subr.mxu1 %v1545_v28 }
 0x19c   : > { %1406 = vmatpush3.msra.mxu1 %v338_v25  ;;  %1379 = vmatprep.mubr.msk.f32.mxu1 %vm474_vm1, %v383_v29 }
 0x19d   : > { %1407 = vmatprep.subr.mxu1 %v1545_v28 }
 0x19e   : > { %1408 = vmatpush3.msra.mxu1 %v335_v26 }
 0x19f   : > { %1380 = vmatmul.mubr.msk.f32.gmra.mxu1 %vm474_vm1, %v384_v35  ;;  %1409 = vmatprep.subr.mxu1 %v1545_v28 }
 0x1a0   : > { %1410 = vmatpush3.msra.mxu1 %v332_v30  ;;  %1382 = vmatprep.mubr.msk.f32.mxu1 %vm474_vm1, %v385_v41  ;;  %v400_v30 = vld [vmem:[%s2048_s4 + $0x68] sm:$0xff] }
 0x1a1   : > { %1411 = vmatprep.subr.mxu1 %v1545_v28 }
 0x1a2   : > { %1412 = vmatpush3.msra.mxu1 %v329_v36 }
 0x1a3   : > { %1383 = vmatmul.mubr.msk.f32.gmra.mxu1 %vm474_vm1, %v386_v42  ;;  %1413 = vmatprep.subr.mxu1 %v1545_v28 }
 0x1a4   : > { %1414 = vmatpush3.msra.mxu1 %v326_v47  ;;  %1417 = vmatprep.mubr.msk.f32.mxu1 %vm1546_vm0, %v1545_v28 }
 0x1a5   : > { %1415 = vmatprep.subr.mxu1 %v1545_v28 }
 0x1a6   : > { %1416 = vmatpush3.msra.mxu1 %v323_v48 }
 0x1a7   : > { %1418 = vmatmul.mubr.f32.vlgmr.msra.gmra.mxu1 %v1752_v54 }
 0x1a8   : > { %1437 = vmatprep.mubr.msk.f32.mxu1 %vm474_vm1, %v381_v24 }
 0x247   : > { %v1363_v49 = vpop.f32.mrf.mxu1 }
 0x249   : > { %v589_v50 = vpop.f32.mrf.mxu1 }
 0x24b   : > { %v1366_v51 = vpop.f32.mrf.mxu1 }
 0x24d   : > { %v599_v52 = vpop.f32.mrf.mxu1 }
 0x24f   : > { %v1874_v53 = vpop.f32.mrf.mxu1 }
 0x251   : > { %v1876_v55 = vpop.f32.mrf.mxu1 }
 0x253   : > { %v1878_v56 = vpop.f32.mrf.mxu1 }
 0x255   : > { %v1880_v57 = vpop.f32.mrf.mxu1 }
 0x257   : > { %v1882_v58 = vpop.f32.mrf.mxu1 }
 0x259   : > { %v1884_v28 = vpop.f32.mrf.mxu1 }
 0x25b   : > { %v1378_v60 = vpop.f32.mrf.mxu1 }
 0x25d   : > { %v639_v54 = vpop.f32.mrf.mxu1 }
 0x25f   : > { %v1381_v61 = vpop.f32.mrf.mxu1 }
 0x261   : > { %v649_v62 = vpop.f32.mrf.mxu1 }
 0x263   : > { %v1886_v63 = vpop.f32.mrf.mxu1 }
 0x265   : > { %v1888_v0 = vpop.f32.mrf.mxu1 }
 0x267   : > { %v734_v1 = vpop.f32.mrf.mxu1 }
 0x268   : > { %v735_v4 = vadd.f32 %v734_v1, %v1764_v59  ;;  %v1547_v59 = vmov 0  }
 0x269   : > { %v1419_v9 = vpop.f32.mrf.mxu1  ;;  %1460 = vset.pattern.permute.xlu0 %v1547_v59  ;;  %1459 = vset.pattern.permute.xlu1 %v1547_v59 }
 0x26a   : > { %v738_v10 = vmax.f32 %v735_v4, 0.0 }
 0x26c   : > { %1420 = vmatprep.subr.mxu0 %v738_v10  ;;  %1446 = vmatprep.subr.mxu1 %v738_v10 }
 0x26d   : > { %1421 = vmatpush3.msra.mxu0 %v738_v10  ;;  %1447 = vmatpush3.msra.mxu1 %v738_v10  ;;  %v655_v10 = vadd.f32 %v1381_v61, %v400_v30 }
 0x26e   : > { %1423 = vmatmul.mubr.msk.f32.vlgmr.msra.gmra.mxu0 %vm474_vm1, %v1770_v2  ;;  %1438 = vmatmul.mubr.msk.f32.vlgmr.msra.gmra.mxu1 %vm474_vm1, %v382_v27  ;;  %v388_v2 = vld [vmem:[%s2048_s4 + $0x8] sm:$0xff] }
 0x26f   : > { %1425 = vmatprep.mubr.msk.f32.mxu0 %vm474_vm1, %v1775_v3  ;;  %1440 = vmatprep.mubr.msk.f32.mxu1 %vm474_vm1, %v383_v29  ;;  %v398_v3 = vld [vmem:[%s2048_s4 + $0x58] sm:$0xff]  ;;  %v595_v17 = vadd.f32 %v1363_v49, %v388_v2 }
 0x270   : > { %v645_v22 = vadd.f32 %v1378_v60, %v398_v3 }
 0x272   : > { %1426 = vmatmul.mubr.msk.f32.gmra.mxu0 %vm474_vm1, %v1785_v7  ;;  %1441 = vmatmul.mubr.msk.f32.gmra.mxu1 %vm474_vm1, %v384_v35  ;;  %v387_v7 = vld [vmem:[%s2048_s4] sm:$0xff] }
 0x273   : > { %1428 = vmatprep.mubr.msk.f32.mxu0 %vm474_vm1, %v1791_v8  ;;  %1443 = vmatprep.mubr.msk.f32.mxu1 %vm474_vm1, %v385_v41  ;;  %v397_v8 = vld [vmem:[%s2048_s4 + $0x50] sm:$0xff]  ;;  %v590_v25 = vadd.f32 %v589_v50, %v387_v7  ;;  %v399_v35 = vld [vmem:[%s2048_s4 + $0x60] sm:$0xff] }
 0x274   : > { %v640_v26 = vadd.f32 %v639_v54, %v397_v8  ;;  %v650_v59 = vadd.f32 %v649_v62, %v399_v35 }
 0x276   : > { %1429 = vmatmul.mubr.msk.f32.gmra.mxu0 %vm474_vm1, %v1801_v11  ;;  %1444 = vmatmul.mubr.msk.f32.gmra.mxu1 %vm474_vm1, %v386_v42 }
 0x277   : > { %1431 = vmatprep.mubr.msk.f32.mxu0 %vm474_vm1, %v1807_v16 }
 0x27a   : > { %1432 = vmatmul.mubr.msk.f32.gmra.mxu0 %vm474_vm1, %v1817_v20  ;;  %v390_v20 = vld [vmem:[%s2048_s4 + $0x18] sm:$0xff] }
 0x27b   : > { %1434 = vmatprep.mubr.msk.f32.mxu0 %vm474_vm1, %v1823_v21  ;;  %v389_v21 = vld [vmem:[%s2048_s4 + $0x10] sm:$0xff]  ;;  %v605_v48 = vadd.f32 %v1366_v51, %v390_v20  ;;  %v392_v51 = vld [vmem:[%s2048_s4 + $0x28] sm:$0xff] }
 0x27c   : > { %v600_v49 = vadd.f32 %v599_v52, %v389_v21  ;;  %v402_v52 = vld [vmem:[%s2048_s4 + $0x78] sm:$0xff] }
 0x27e   : > { %1435 = vmatmul.mubr.msk.f32.gmra.mxu0 %vm474_vm1, %v1833_v23 }
 0x32e   : > { %v1424_v11 = vpop.f32.mrf.mxu0  ;;  %v1439_v16 = vpop.f32.mrf.mxu1 }
 0x32f   : > { %v811_v23 = vadd.f32 %v1424_v11, %v388_v2  ;;  %v861_v24 = vadd.f32 %v1439_v16, %v398_v3 }
 0x330   : > { %v805_v27 = vpop.f32.mrf.mxu0  ;;  %v855_v29 = vpop.f32.mrf.mxu1 }
 0x331   : > { %v885_v36 = vadd.f32 %v811_v23, %v595_v17  ;;  %v895_v41 = vadd.f32 %v861_v24, %v645_v22  ;;  %v806_v42 = vadd.f32 %v805_v27, %v387_v7  ;;  %v856_v47 = vadd.f32 %v855_v29, %v397_v8 }
 0x332   : > { %v1427_v60 = vpop.f32.mrf.mxu0  ;;  %v1442_v1 = vpop.f32.mrf.mxu1 }
 0x333   : > { %v1237_v50 = vmul.f32 -1.442695, %v885_v36  ;;  %v1247_v54 = vmul.f32 -1.442695, %v895_v41  ;;  %v884_v4 = vadd.f32 %v806_v42, %v590_v25  ;;  %v894_v9 = vadd.f32 %v856_v47, %v640_v26  ;;  %v391_v41 = vld [vmem:[%s2048_s4 + $0x20] sm:$0xff] }
 0x334   : > { %v821_v2 = vadd.f32 %v1427_v60, %v390_v20  ;;  %v871_v3 = vadd.f32 %v1442_v1, %v400_v30  ;;  %v815_v11 = vpop.f32.mrf.mxu0  ;;  %v865_v16 = vpop.f32.mrf.mxu1  ;;  %v615_v30 = vadd.f32 %v1874_v53, %v392_v51  ;;  %v610_v53 = vadd.f32 %v1876_v55, %v391_v41  ;;  %v393_v55 = vld [vmem:[%s2048_s4 + $0x30] sm:$0xff] }
 0x335   : > { %1461 = vpow2.f32 %v1237_v50  ;;  %v1236_v34 = vmul.f32 -1.442695, %v884_v4  ;;  %v1246_v17 = vmul.f32 -1.442695, %v894_v9  ;;  %v816_v22 = vadd.f32 %v815_v11, %v389_v21 }
 0x336   : > { %1463 = vpow2.f32 %v1247_v54  ;;  %v887_v7 = vadd.f32 %v821_v2, %v605_v48  ;;  %v897_v61 = vadd.f32 %v871_v3, %v655_v10  ;;  %v866_v62 = vadd.f32 %v865_v16, %v399_v35  ;;  %v1430_v8 = vpop.f32.mrf.mxu0  ;;  %v1445_v20 = vpop.f32.mrf.mxu1  ;;  %v396_v48 = vld [vmem:[%s2048_s4 + $0x48] sm:$0xff] }
 0x337   : > { %1465 = vpow2.f32 %v1236_v34  ;;  %v886_v23 = vadd.f32 %v816_v22, %v600_v49  ;;  %v831_v24 = vadd.f32 %v1430_v8, %v392_v51  ;;  %v881_v25 = vadd.f32 %v1445_v20, %v402_v52 }
 0x338   : > { %1467 = vpow2.f32 %v1246_v17  ;;  %v1239_v21 = vmul.f32 -1.442695, %v887_v7  ;;  %v1249_v26 = vmul.f32 -1.442695, %v897_v61  ;;  %v896_v27 = vadd.f32 %v866_v62, %v650_v59  ;;  %v825_v29 = vpop.f32.mrf.mxu0 }
 0x339   : > { %v1238_v36 = vmul.f32 -1.442695, %v886_v23  ;;  %v665_v35 = vadd.f32 %v1886_v63, %v402_v52  ;;  %v889_v34 = vadd.f32 %v831_v24, %v615_v30  ;;  %v826_v47 = vadd.f32 %v825_v29, %v391_v41  ;;  %v394_v63 = vld [vmem:[%s2048_s4 + $0x38] sm:$0xff] }
 0x33a   : > { %1469 = vpow2.f32 %v1239_v21  ;;  %v1433_v42 = vpop.f32.mrf.mxu0  ;;  %v1248_v49 = vmul.f32 -1.442695, %v896_v27  ;;  %v635_v54 = vadd.f32 %v1882_v58, %v396_v48  ;;  %v625_v16 = vadd.f32 %v1878_v56, %v394_v63  ;;  %v875_v27 = vpop.f32.mrf.mxu1 }
 0x33b   : > { %1471 = vpow2.f32 %v1249_v26  ;;  %v899_v60 = vadd.f32 %v881_v25, %v665_v35  ;;  %v1241_v4 = vmul.f32 -1.442695, %v889_v34  ;;  %v888_v9 = vadd.f32 %v826_v47, %v610_v53  ;;  %v395_v26 = vld [vmem:[%s2048_s4 + $0x40] sm:$0xff] }
 0x33c   : > { %v835_v1 = vpop.f32.mrf.mxu0  ;;  %1473 = vpow2.f32 %v1238_v36  ;;  %v841_v2 = vadd.f32 %v1433_v42, %v394_v63  ;;  %v620_v20 = vadd.f32 %v1880_v57, %v393_v55  ;;  %v401_v57 = vld [vmem:[%s2048_s4 + $0x70] sm:$0xff]  ;;  %v630_v34 = vadd.f32 %v1884_v28, %v395_v26 }
 0x33d   : > { %1475 = vpow2.f32 %v1248_v49  ;;  %v1251_v59 = vmul.f32 -1.442695, %v899_v60  ;;  %v1240_v51 = vmul.f32 -1.442695, %v888_v9  ;;  %v836_v61 = vadd.f32 %v835_v1, %v393_v55 }
 0x33e   : > { %v1436_v50 = vpop.f32.mrf.mxu0  ;;  %1477 = vpow2.f32 %v1241_v4  ;;  %v891_v7 = vadd.f32 %v841_v2, %v625_v16  ;;  %v876_v47 = vadd.f32 %v875_v27, %v401_v57  ;;  %v660_v60 = vadd.f32 %v1888_v0, %v401_v57 }
 0x33f   : > { %v851_v10 = vadd.f32 %v1436_v50, %v396_v48  ;;  %1479 = vpow2.f32 %v1251_v59  ;;  %v890_v30 = vadd.f32 %v836_v61, %v620_v20 }
 0x340   : > { %v845_v24 = vpop.f32.mrf.mxu0  ;;  %v1243_v29 = vmul.f32 -1.442695, %v891_v7  ;;  %v898_v50 = vadd.f32 %v876_v47, %v660_v60 }
 0x341   : > { %v893_v3 = vadd.f32 %v851_v10, %v635_v54  ;;  %v846_v41 = vadd.f32 %v845_v24, %v395_v26  ;;  %v1242_v48 = vmul.f32 -1.442695, %v890_v30 }
 0x342   : > { %v1462_v11 = vpop.eup %1461  ;;  %v1250_v28 = vmul.f32 -1.442695, %v898_v50 }
 0x343   : > { %v1464_v17 = vpop.eup %1463  ;;  %v949_v22 = vadd.f32 1.0, %v1462_v11  ;;  %v1245_v8 = vmul.f32 -1.442695, %v893_v3  ;;  %v892_v53 = vadd.f32 %v846_v41, %v630_v34 }
 0x344   : > { %v1466_v52 = vpop.eup %1465  ;;  %v959_v58 = vadd.f32 1.0, %v1464_v17 }
 0x345   : > { %v1468_v62 = vpop.eup %1467  ;;  %1481 = vrcp.f32 %v949_v22  ;;  %v948_v56 = vadd.f32 1.0, %v1466_v52  ;;  %v1244_v9 = vmul.f32 -1.442695, %v892_v53 }
 0x346   : > { %1483 = vrcp.f32 %v959_v58  ;;  %v958_v23 = vadd.f32 1.0, %v1468_v62 }
 0x347   : > { %v1470_v25 = vpop.eup %1469  ;;  %1485 = vpow2.f32 %v1240_v51 }
 0x348   : > { %v1472_v21 = vpop.eup %1471  ;;  %1487 = vrcp.f32 %v958_v23  ;;  %v951_v36 = vadd.f32 1.0, %v1470_v25 }
 0x349   : > { %1489 = vpow2.f32 %v1245_v8  ;;  %v1474_v35 = vpop.eup %1473  ;;  %v961_v42 = vadd.f32 1.0, %v1472_v21 }
 0x34a   : > { %1491 = vrcp.f32 %v948_v56  ;;  %v1476_v49 = vpop.eup %1475  ;;  %v950_v1 = vadd.f32 1.0, %v1474_v35 }
 0x34b   : > { %1493 = vpow2.f32 %v1243_v29  ;;  %v1478_v63 = vpop.eup %1477  ;;  %v960_v54 = vadd.f32 1.0, %v1476_v49 }
 0x34c   : > { %1495 = vrcp.f32 %v951_v36  ;;  %v1480_v4 = vpop.eup %1479  ;;  %v953_v3 = vadd.f32 1.0, %v1478_v63 }
 0x34d   : > { %1497 = vrcp.f32 %v961_v42  ;;  %v963_v55 = vadd.f32 1.0, %v1480_v4 }
 0x34e   : > { %1499 = vpow2.f32 %v1242_v48 }
 0x34f   : > { %1501 = vrcp.f32 %v950_v1 }
 0x350   : > { %1503 = vrcp.f32 %v960_v54 }
 0x351   : > { %1505 = vpow2.f32 %v1244_v9 }
 0x352   : > { %v1482_v10 = vpop.eup %1481  ;;  %1507 = vpow2.f32 %v1250_v28 }
 0x353   : > { %v1484_v59 = vpop.eup %1483  ;;  %1003 = vperm.xlu1 %1459, %v1482_v10   ;;  %1509 = vrcp.f32 %v953_v3 }
 0x354   : > { %v1486_v2 = vpop.eup %1485  ;;  %1053 = vperm.xlu0 %1460, %v1484_v59  }
 0x355   : > { %v1488_v0 = vpop.eup %1487  ;;  %v952_v51 = vadd.f32 1.0, %v1486_v2 }
 0x356   : > { %v1490_v11 = vpop.eup %1489 }
 0x357   : > { %v1492_v16 = vpop.eup %1491  ;;  %v957_v17 = vadd.f32 1.0, %v1490_v11  ;;  %1048 = vperm.xlu1 %1459, %v1488_v0  }
 0x358   : > { %998 = vperm.xlu0 %1460, %v1492_v16   ;;  %v1494_v22 = vpop.eup %1493 }
 0x359   : > { %1511 = vrcp.f32 %v957_v17  ;;  %v1496_v52 = vpop.eup %1495  ;;  %v955_v61 = vadd.f32 1.0, %v1494_v22  ;;  %v2052_v17 = vld [vmem:[#allocation2_spill] sm:$0xff]  ;;  %v1529_v22 = vld [vmem:[%s1594_s23 + $0x70] sm:$0xff] }
 0x35a   : > { %v1498_v58 = vpop.eup %1497  ;;  %1513 = vrcp.f32 %v963_v55 }
 0x35b   : > { %1013 = vperm.xlu1 %1459, %v1496_v52   ;;  %v1500_v7 = vpop.eup %1499  ;;  %1515 = vrcp.f32 %v952_v51  ;;  %v1530_v52 = vld [vmem:[%s1594_s23 + $0x78] sm:$0xff] }
 0x35c   : > { %1063 = vperm.xlu0 %1460, %v1498_v58   ;;  %v1502_v62 = vpop.eup %1501  ;;  %1517 = vrcp.f32 %v955_v61  ;;  %v954_v20 = vadd.f32 1.0, %v1500_v7  ;;  %v1531_v7 = vld [vmem:[%s1594_s23 + $0x60] sm:$0xff] }
 0x35d   : > { %v1504_v8 = vpop.eup %1503 }
 0x35e   : > { %v1506_v56 = vpop.eup %1505  ;;  %1519 = vrcp.f32 %v954_v20 }
 0x35f   : > { %1008 = vperm.xlu1 %1459, %v1502_v62   ;;  %v1508_v23 = vpop.eup %1507  ;;  %v956_v25 = vadd.f32 1.0, %v1506_v56  ;;  %v1532_v62 = vld [vmem:[%s1594_s23 + $0x68] sm:$0xff]  ;;  %v1533_v56 = vld [vmem:[%s1594_s23 + $0x80] sm:$0xff] }
 0x360   : > { %v1510_v24 = vpop.eup %1509  ;;  %v962_v27 = vadd.f32 1.0, %v1508_v23 }
 0x361   : > { %1521 = vrcp.f32 %v956_v25 }
 0x362   : > { %1523 = vrcp.f32 %v962_v27 }
 0x363   : > { %1058 = vperm.xlu1 %1459, %v1504_v8  }
 0x366   : > { %v1512_v21 = vpop.eup %1511 }
 0x367   : > { %1043 = vperm.xlu0 %1460, %v1512_v21   ;;  %1023 = vperm.xlu1 %1459, %v1510_v24   ;;  %v1514_v26 = vpop.eup %1513  ;;  %v1534_v24 = vld [vmem:[%s1594_s23 + $0x88] sm:$0xff] }
 0x368   : > { %v1516_v29 = vpop.eup %1515 }
 0x369   : > { %v1518_v30 = vpop.eup %1517 }
 0x36b   : > { %1073 = vperm.xlu0 %1460, %v1514_v26   ;;  %1018 = vperm.xlu1 %1459, %v1516_v29   ;;  %v1520_v36 = vpop.eup %1519  ;;  %v1535_v26 = vld [vmem:[%s1594_s23 + $0xe0] sm:$0xff]  ;;  %v1536_v29 = vld [vmem:[%s1594_s23 + $0xe8] sm:$0xff] }
 0x36e   : > { %v1522_v41 = vpop.eup %1521 }
 0x36f   : > { %1033 = vperm.xlu1 %1459, %v1518_v30   ;;  %v1524_v35 = vpop.eup %1523 }
 0x373   : > { %1028 = vperm.xlu1 %1459, %v1520_v36  }
 0x377   : > { %1038 = vperm.xlu1 %1459, %v1522_v41  }
 0x37b   : > { %1068 = vperm.xlu1 %1459, %v1524_v35  }
 0x3ce   : > { %v1004_v57 = vpop.permute.xlu1 %1003 }
 0x3cf   : > { %v1078_v42 = vmul.f32 %v1004_v57, %v1692_v43  ;;  %v1079_v34 = vmul.f32 %v1004_v57, %v1695_v44  ;;  %v1054_v47 = vpop.permute.xlu0 %1053 }
 0x3d0   : > { %v1098_v48 = vmul.f32 %v1054_v47, %v1629_v12  ;;  %v1099_v49 = vmul.f32 %v1054_v47, %v1632_v13 }
 0x3d1   : > { %1110 = vst [vmem:[%s1975_s6 + $0x10] sm:$0xff] %v1078_v42  ;;  %1111 = vst [vmem:[%s1975_s6 + $0x18] sm:$0xff] %v1079_v34 }
 0x3d2   : > { %1130 = vst [vmem:[%s1975_s6 + $0xb0] sm:$0xff] %v1098_v48  ;;  %1131 = vst [vmem:[%s1975_s6 + $0xb8] sm:$0xff] %v1099_v49  ;;  %v1049_v60 = vpop.permute.xlu1 %1048 }
 0x3d3   : > { %v999_v1 = vpop.permute.xlu0 %998  ;;  %v1096_v43 = vmul.f32 %v1049_v60, %v1635_v14  ;;  %v1097_v44 = vmul.f32 %v1049_v60, %v1638_v15 }
 0x3d4   : > { %v1076_v53 = vmul.f32 %v999_v1, %v1698_v45  ;;  %v1077_v12 = vmul.f32 %v999_v1, %v1701_v46 }
 0x3d5   : > { %1128 = vst [vmem:[%s1975_s6 + $0xa0] sm:$0xff] %v1096_v43  ;;  %1129 = vst [vmem:[%s1975_s6 + $0xa8] sm:$0xff] %v1097_v44 }
 0x3d6   : > { %1108 = vst [vmem:[%s1975_s6] sm:$0xff] %v1076_v53  ;;  %1109 = vst [vmem:[%s1975_s6 + $0x8] sm:$0xff] %v1077_v12  ;;  %v1014_v13 = vpop.permute.xlu1 %1013 }
 0x3d7   : > { %v1064_v50 = vpop.permute.xlu0 %1063  ;;  %v1082_v63 = vmul.f32 %v1014_v13, %v1676_v37  ;;  %v1083_v14 = vmul.f32 %v1014_v13, %v1679_v38 }
 0x3d8   : > { %v1102_v15 = vmul.f32 %v1064_v50, %v1611_v5  ;;  %v1103_v45 = vmul.f32 %v1064_v50, %v1614_v6  ;;  %v1525_v5 = vld [vmem:[%s1594_s23 + $0xc0] sm:$0xff]  ;;  %v1526_v6 = vld [vmem:[%s1594_s23 + $0xc8] sm:$0xff] }
 0x3d9   : > { %1114 = vst [vmem:[%s1975_s6 + $0x30] sm:$0xff] %v1082_v63  ;;  %1115 = vst [vmem:[%s1975_s6 + $0x38] sm:$0xff] %v1083_v14 }
 0x3da   : > { %1134 = vst [vmem:[%s1975_s6 + $0xd0] sm:$0xff] %v1102_v15  ;;  %1135 = vst [vmem:[%s1975_s6 + $0xd8] sm:$0xff] %v1103_v45  ;;  %v1009_v46 = vpop.permute.xlu1 %1008 }
 0x3db   : > { %v1080_v54 = vmul.f32 %v1009_v46, %v1682_v39  ;;  %v1081_v4 = vmul.f32 %v1009_v46, %v1685_v40 }
 0x3dd   : > { %1112 = vst [vmem:[%s1975_s6 + $0x20] sm:$0xff] %v1080_v54  ;;  %1113 = vst [vmem:[%s1975_s6 + $0x28] sm:$0xff] %v1081_v4 }
 0x3de   : > { %v1059_v37 = vpop.permute.xlu1 %1058 }
 0x3df   : > { %v1100_v38 = vmul.f32 %v1525_v5, %v1059_v37  ;;  %v1101_v9 = vmul.f32 %v1526_v6, %v1059_v37 }
 0x3e1   : > { %1132 = vst [vmem:[%s1975_s6 + $0xc0] sm:$0xff] %v1100_v38  ;;  %1133 = vst [vmem:[%s1975_s6 + $0xc8] sm:$0xff] %v1101_v9 }
 0x3e2   : > { %v1044_v10 = vpop.permute.xlu0 %1043  ;;  %v1024_v59 = vpop.permute.xlu1 %1023 }
 0x3e3   : > { %v1094_v39 = vmul.f32 %v1044_v10, %v1645_v18  ;;  %v1095_v40 = vmul.f32 %v1044_v10, %v1648_v19  ;;  %v1086_v28 = vmul.f32 %v1024_v59, %v1660_v31  ;;  %v1087_v2 = vmul.f32 %v1024_v59, %v1663_v32  ;;  %v1527_v18 = vld [vmem:[%s1594_s23 + $0xf0] sm:$0xff]  ;;  %v1528_v19 = vld [vmem:[%s1594_s23 + $0xf8] sm:$0xff] }
 0x3e5   : > { %1126 = vst [vmem:[%s1975_s6 + $0x90] sm:$0xff] %v1094_v39  ;;  %1127 = vst [vmem:[%s1975_s6 + $0x98] sm:$0xff] %v1095_v40 }
 0x3e6   : > { %1118 = vst [vmem:[%s1975_s6 + $0x50] sm:$0xff] %v1086_v28  ;;  %1119 = vst [vmem:[%s1975_s6 + $0x58] sm:$0xff] %v1087_v2  ;;  %v1074_v3 = vpop.permute.xlu0 %1073  ;;  %v1019_v0 = vpop.permute.xlu1 %1018 }
 0x3e7   : > { %v1106_v11 = vmul.f32 %v1527_v18, %v1074_v3  ;;  %v1107_v16 = vmul.f32 %v1528_v19, %v1074_v3  ;;  %v1084_v31 = vmul.f32 %v1019_v0, %v1666_v33  ;;  %v1085_v32 = vmul.f32 %v1019_v0, %v2052_v17 }
 0x3e9   : > { %1138 = vst [vmem:[%s1975_s6 + $0xf0] sm:$0xff] %v1106_v11  ;;  %1139 = vst [vmem:[%s1975_s6 + $0xf8] sm:$0xff] %v1107_v16 }
 0x3ea   : > { %1116 = vst [vmem:[%s1975_s6 + $0x40] sm:$0xff] %v1084_v31  ;;  %1117 = vst [vmem:[%s1975_s6 + $0x48] sm:$0xff] %v1085_v32  ;;  %v1034_v55 = vpop.permute.xlu1 %1033 }
 0x3eb   : > { %v1090_v51 = vmul.f32 %v1529_v22, %v1034_v55  ;;  %v1091_v58 = vmul.f32 %v1530_v52, %v1034_v55 }
 0x3ed   : > { %1122 = vst [vmem:[%s1975_s6 + $0x70] sm:$0xff] %v1090_v51  ;;  %1123 = vst [vmem:[%s1975_s6 + $0x78] sm:$0xff] %v1091_v58 }
 0x3ee   : > { %v1029_v33 = vpop.permute.xlu1 %1028 }
 0x3ef   : > { %v1088_v61 = vmul.f32 %v1531_v7, %v1029_v33  ;;  %v1089_v8 = vmul.f32 %v1532_v62, %v1029_v33 }
 0x3f1   : > { %1120 = vst [vmem:[%s1975_s6 + $0x60] sm:$0xff] %v1088_v61  ;;  %1121 = vst [vmem:[%s1975_s6 + $0x68] sm:$0xff] %v1089_v8 }
 0x3f2   : > { %v1039_v20 = vpop.permute.xlu1 %1038 }
 0x3f3   : > { %v1092_v23 = vmul.f32 %v1533_v56, %v1039_v20  ;;  %v1093_v25 = vmul.f32 %v1534_v24, %v1039_v20 }
 0x3f5   : > { %1124 = vst [vmem:[%s1975_s6 + $0x80] sm:$0xff] %v1092_v23  ;;  %1125 = vst [vmem:[%s1975_s6 + $0x88] sm:$0xff] %v1093_v25 }
 0x3f6   : > { %v1069_v21 = vpop.permute.xlu1 %1068 }
 0x3f7   : > { %v1104_v27 = vmul.f32 %v1535_v26, %v1069_v21  ;;  %v1105_v30 = vmul.f32 %v1536_v29, %v1069_v21 }
 0x3f9   : > { %1136 = vst [vmem:[%s1975_s6 + $0xe0] sm:$0xff] %v1104_v27  ;;  %1137 = vst [vmem:[%s1975_s6 + $0xe8] sm:$0xff] %v1105_v30 }
 0x3fa PF: > { %s15_s18 = sadd.s32 1, %s1543_s18  }
 0x3fb   : > { %p12_p4 = scmp.ge.s32.totalorder %s15_s18, 4  }
 0x3fd   :  { %14 = sbr.rel (!%p12_p4) target bundleno = 1 (0x1), region = 70 }

</bundles_post_ra>
